<compile_context>
chip_gen: v7x
topology: tpu7x:2x2x1
jax: 0.10.0
libtpu: 0.0.40
codegen_flags: <defaults>
</compile_context>

<pallas_src>
import functools

import jax
import jax.numpy as jnp
from jax.experimental import pallas as pl
from jax.experimental.pallas import tpu as pltpu


def _round_up(n, m):
    return ((n + m - 1) // m) * m


def _cdiv(a, b):
    return (a + b - 1) // b


def resblock_kernel(x_ref, w1_ref, b1_ref, w2_ref, w3_ref, b23_ref,
                    lnw_ref, lnb_ref, o_ref, acc_ref, *, d_out, eps):
    """One (batch tile, hidden tile) step.

    grid = (n_b, n_h): batch axis is parallel, hidden axis is the reduction.
    acc_ref is a per-batch-tile f32 accumulator resident across the hidden axis.
    """
    k = pl.program_id(1)
    n_k = pl.num_programs(1)

    x = x_ref[...]                                    # (tb, D_in_p) bf16

    @pl.when(k == 0)
    def _():
        # Residual branch fc3(x) + fused bias (b2 + b3). Padded output lanes of
        # w3 / b23 are zero, so padded lanes of the accumulator stay exactly 0.
        acc_ref[...] = (
            jnp.dot(x, w3_ref[...], preferred_element_type=jnp.float32)
            + b23_ref[...])

    # fc1 slice + ReLU (f32), cast once, fc2 slice accumulated on the MXU.
    h = jnp.dot(x, w1_ref[...], preferred_element_type=jnp.float32) + b1_ref[...]
    h = jnp.maximum(h, 0.0).astype(jnp.bfloat16)
    acc_ref[...] += jnp.dot(h, w2_ref[...], preferred_element_type=jnp.float32)

    @pl.when(k == n_k - 1)
    def _():
        y = acc_ref[...]                              # (tb, D_out_p) f32, padded lanes == 0
        inv_n = 1.0 / d_out
        mean = jnp.sum(y, axis=-1, keepdims=True) * inv_n
        # Padded lanes contribute 0 to sum(y*y), so E[y^2] - mean^2 is exact
        # over the true D_out without any mask.
        var = jnp.sum(y * y, axis=-1, keepdims=True) * inv_n - mean * mean
        inv_std = jax.lax.rsqrt(jnp.maximum(var, 0.0) + eps)
        o_ref[...] = ((y - mean) * inv_std * lnw_ref[...]
                      + lnb_ref[...]).astype(o_ref.dtype)


def resblock_forward(x, params, *, tile_b=256, eps=1e-5,
                     out_dtype=jnp.float32, vmem_fraction=0.75,
                     force_h_tiles=None):
    """x: (B, input_dim) float32. params: dict of f32 weights (see init_params)."""
    B, D_in = x.shape
    H = params["w1"].shape[1]
    D_out = params["w2"].shape[1]

    # Lane-dense padded feature dims (zero padding keeps the math exact).
    D_in_p = _round_up(D_in, 128)
    H_p = _round_up(H, 128)
    D_out_p = _round_up(D_out, 128)

    # --- batch tiling: multiple of 16 (bf16 sublane packing), balanced tiles
    # to minimize pad waste, and >=2 grid steps for megacore when B allows.
    B_16 = _round_up(B, 16)
    n_b = _cdiv(B_16, max(int(tile_b), 16))
    if n_b == 1 and B_16 >= 256:
        n_b = 2
    tb = _round_up(_cdiv(B_16, n_b), 16)
    B_p = tb * n_b

    # --- VMEM budget (leave headroom for compiler scratch / intermediates).
    try:
        vmem_cap = int(pltpu.get_tpu_info().vmem_capacity_bytes)
    except Exception:
        vmem_cap = 64 * 1024 * 1024
    vmem_budget = int(vmem_cap * vmem_fraction)

    out_isz = jnp.dtype(out_dtype).itemsize

    def _vmem_estimate(th, nbuf_w):
        by = 0
        by += 2 * tb * D_in_p * 2                        # x block (bf16, double-buffered)
        by += nbuf_w * 2 * th * (D_in_p + D_out_p)       # w1 / w2 tiles (bf16)
        by += nbuf_w * 4 * th                            # b1 tile (f32)
        by += 2 * D_in_p * D_out_p                       # w3 (bf16, single-buffered)
        by += 3 * 4 * D_out_p                            # b23 / ln_w / ln_b (f32)
        by += 2 * tb * D_out_p * out_isz                 # output block (double-buffered)
        by += 4 * tb * D_out_p                           # f32 accumulator scratch
        by += tb * th * 6 + 3 * tb * D_out_p * 4         # live intermediates (rough)
        return by

    # --- hidden-dim (reduction) tiling: only when the working set won't fit.
    if force_h_tiles is not None:
        n_h = int(force_h_tiles)
        tile_h = _round_up(_cdiv(H_p, n_h), 128)
    else:
        n_h = 1
        tile_h = H_p
        while tile_h > 256 and _vmem_estimate(tile_h, 2 if n_h > 1 else 1) > vmem_budget:
            n_h *= 2
            tile_h = _round_up(_cdiv(H_p, n_h), 128)
    H_pad = tile_h * n_h
    nbuf_w = 1 if n_h == 1 else 2    # w1/b1/w2 are grid-invariant only if untiled

    def pad2(a, rows, cols, dtype):
        a = a.astype(dtype)
        return jnp.pad(a, ((0, rows - a.shape[0]), (0, cols - a.shape[1])))

    # bf16 matmul operands; biases / LN params stay f32. b2+b3 fused once here.
    xp = pad2(x, B_p, D_in_p, jnp.bfloat16)
    w1 = pad2(params["w1"], D_in_p, H_pad, jnp.bfloat16)
    w2 = pad2(params["w2"], H_pad, D_out_p, jnp.bfloat16)
    w3 = pad2(params["w3"], D_in_p, D_out_p, jnp.bfloat16)
    b1 = pad2(params["b1"], 1, H_pad, jnp.float32)
    b23 = pad2(params["b2"] + params["b3"], 1, D_out_p, jnp.float32)
    lnw = pad2(params["ln_w"], 1, D_out_p, jnp.float32)
    lnb = pad2(params["ln_b"], 1, D_out_p, jnp.float32)

    def spec(shape, imap, nbuf=2):
        if nbuf == 1:
            return pl.BlockSpec(shape, imap, pipeline_mode=pl.Buffered(1))
        return pl.BlockSpec(shape, imap)

    grid = (n_b, n_h)

    flops = 2 * B_p * (D_in_p * H_pad + H_pad * D_out_p + D_in_p * D_out_p)
    bytes_accessed = (
        xp.size * 2 + w1.size * 2 + w2.size * 2 + w3.size * 2
        + (b1.size + b23.size + lnw.size + lnb.size) * 4
        + B_p * D_out_p * out_isz)

    out = pl.pallas_call(
        functools.partial(resblock_kernel, d_out=D_out, eps=eps),
        out_shape=jax.ShapeDtypeStruct((B_p, D_out_p), out_dtype),
        grid=grid,
        in_specs=[
            spec((tb, D_in_p), lambda i, k: (i, 0)),                 # x tile
            spec((D_in_p, tile_h), lambda i, k: (0, k), nbuf_w),     # w1 slice
            spec((1, tile_h), lambda i, k: (0, k), nbuf_w),          # b1 slice
            spec((tile_h, D_out_p), lambda i, k: (k, 0), nbuf_w),    # w2 slice
            spec((D_in_p, D_out_p), lambda i, k: (0, 0), 1),         # w3 (constant)
            spec((1, D_out_p), lambda i, k: (0, 0), 1),              # b2 + b3 (constant)
            spec((1, D_out_p), lambda i, k: (0, 0), 1),              # ln weight (constant)
            spec((1, D_out_p), lambda i, k: (0, 0), 1),              # ln bias (constant)
        ],
        out_specs=pl.BlockSpec((tb, D_out_p), lambda i, k: (i, 0)),
        scratch_shapes=[pltpu.VMEM((tb, D_out_p), jnp.float32)],
        compiler_params=pltpu.CompilerParams(
            dimension_semantics=("parallel", "arbitrary"),
            vmem_limit_bytes=vmem_budget,
        ),
        cost_estimate=pl.CostEstimate(
            flops=flops, transcendentals=B_p, bytes_accessed=bytes_accessed),
    )(xp, w1, b1, w2, w3, b23, lnw, lnb)

    return out[:B, :D_out]


def init_params(key, input_dim, hidden_dim, output_dim):
    """Deterministic synthetic init (uniform, PyTorch-Linear-like fan-in scale)."""
    ks = jax.random.split(key, 6)

    def lin(kw, kb, fan_in, fan_out):
        bound = 1.0 / jnp.sqrt(fan_in)
        w = jax.random.uniform(kw, (fan_in, fan_out), jnp.float32, -bound, bound)
        b = jax.random.uniform(kb, (1, fan_out), jnp.float32, -bound, bound)
        return w, b

    w1, b1 = lin(ks[0], ks[1], input_dim, hidden_dim)
    w2, b2 = lin(ks[2], ks[3], hidden_dim, output_dim)
    w3, b3 = lin(ks[4], ks[5], input_dim, output_dim)
    return {
        "w1": w1, "b1": b1,
        "w2": w2, "b2": b2,
        "w3": w3, "b3": b3,
        "ln_w": jnp.ones((1, output_dim), jnp.float32),
        "ln_b": jnp.zeros((1, output_dim), jnp.float32),
    }


def resblock_reference(x, p):
    """Pure-JAX reference (f32) for correctness checking."""
    h = jnp.maximum(x @ p["w1"] + p["b1"], 0.0)
    out = h @ p["w2"] + p["b2"]
    y = out + (x @ p["w3"] + p["b3"])
    mean = jnp.mean(y, -1, keepdims=True)
    var = jnp.mean((y - mean) ** 2, -1, keepdims=True)
    return (y - mean) / jnp.sqrt(var + 1e-5) * p["ln_w"] + p["ln_b"]


def _check(out, x, params):
    # Tight check vs. a reference mirroring the kernel's bf16 matmul operands.
    p_bf16 = dict(params)
    for k in ("w1", "w2", "w3"):
        p_bf16[k] = params[k].astype(jnp.bfloat16).astype(jnp.float32)
    x_bf16 = x.astype(jnp.bfloat16).astype(jnp.float32)
    ref_mirror = resblock_reference(x_bf16, p_bf16)
    assert jnp.allclose(out, ref_mirror, atol=2e-3, rtol=2e-3), \
        "mismatch vs bf16-mirrored reference"
    # Loose check vs. the full-f32 reference.
    ref_f32 = resblock_reference(x, params)
    assert jnp.allclose(out, ref_f32, atol=5e-2, rtol=5e-2), \
        "mismatch vs f32 reference"


if __name__ == "__main__":
    key = jax.random.PRNGKey(0)
    k_x, k_p, k_x2, k_p2 = jax.random.split(key, 4)

    # --- Test 1: small demo shapes, single hidden tile (n_h == 1 path).
    B, input_dim, hidden_dim, output_dim = 8, 16, 32, 24
    x = jax.random.normal(k_x, (B, input_dim), jnp.float32)
    params = init_params(k_p, input_dim, hidden_dim, output_dim)
    out = jax.block_until_ready(resblock_forward(x, params))
    assert out.shape == (B, output_dim)
    _check(out, x, params)

    # --- Test 2: force the hidden-dim (reduction) tiled path and a 2-step
    # batch grid, so the accumulator / pl.when init-finalize path is exercised.
    B2, in2, hid2, out2 = 32, 48, 256, 40
    x2 = jax.random.normal(k_x2, (B2, in2), jnp.float32)
    params2 = init_params(k_p2, in2, hid2, out2)
    o2 = jax.block_until_ready(
        resblock_forward(x2, params2, tile_b=16, force_h_tiles=2))
    assert o2.shape == (B2, out2)
    _check(o2, x2, params2)

    print("KERNEL_OK")
</pallas_src>

<mosaic_0001>
module attributes {stable_mosaic.version = 11 : i64} {
  func.func @resblock_kernel(%arg0: i32, %arg1: i32, %arg2: memref<16x128xbf16, #tpu.memory_space<vmem>>, %arg3: memref<128x128xbf16, #tpu.memory_space<vmem>>, %arg4: memref<1x128xf32, #tpu.memory_space<vmem>>, %arg5: memref<128x128xbf16, #tpu.memory_space<vmem>>, %arg6: memref<128x128xbf16, #tpu.memory_space<vmem>>, %arg7: memref<1x128xf32, #tpu.memory_space<vmem>>, %arg8: memref<1x128xf32, #tpu.memory_space<vmem>>, %arg9: memref<1x128xf32, #tpu.memory_space<vmem>>, %arg10: memref<16x128xf32, #tpu.memory_space<vmem>>, %arg11: memref<16x128xf32, #tpu.memory_space<vmem>>) attributes {dimension_semantics = [#tpu.dimension_semantics<parallel>, #tpu.dimension_semantics<arbitrary>], iteration_bounds = array<i64: 1, 1>, scalar_prefetch = 0 : i64, scratch_operands = 1 : i64, tpu.core_type = #tpu.core_type<tc>, window_params = [{transform_indices = @transform_0, window_bounds = array<i64: 16, 128>}, {pipeline_mode = #tpu.pipeline_mode<synchronous>, transform_indices = @transform_1, window_bounds = array<i64: 128, 128>}, {pipeline_mode = #tpu.pipeline_mode<synchronous>, transform_indices = @transform_2, window_bounds = array<i64: 1, 128>}, {pipeline_mode = #tpu.pipeline_mode<synchronous>, transform_indices = @transform_3, window_bounds = array<i64: 128, 128>}, {pipeline_mode = #tpu.pipeline_mode<synchronous>, transform_indices = @transform_4, window_bounds = array<i64: 128, 128>}, {pipeline_mode = #tpu.pipeline_mode<synchronous>, transform_indices = @transform_5, window_bounds = array<i64: 1, 128>}, {pipeline_mode = #tpu.pipeline_mode<synchronous>, transform_indices = @transform_6, window_bounds = array<i64: 1, 128>}, {pipeline_mode = #tpu.pipeline_mode<synchronous>, transform_indices = @transform_7, window_bounds = array<i64: 1, 128>}, {transform_indices = @transform_8, window_bounds = array<i64: 16, 128>}]} {
    %c0 = arith.constant 0 : index
    %c0_0 = arith.constant 0 : index
    %0 = vector.load %arg2[%c0, %c0_0] : memref<16x128xbf16, #tpu.memory_space<vmem>>, vector<16x128xbf16>
    %c0_i32 = arith.constant 0 : i32
    %1 = arith.cmpi eq, %arg1, %c0_i32 : i32
    %2 = arith.extui %1 : i1 to i32
    %c0_i32_1 = arith.constant 0 : i32
    %3 = arith.cmpi ne, %2, %c0_i32_1 : i32
    scf.if %3 {
      %c0_16 = arith.constant 0 : index
      %c0_17 = arith.constant 0 : index
      %20 = vector.load %arg6[%c0_16, %c0_17] : memref<128x128xbf16, #tpu.memory_space<vmem>>, vector<128x128xbf16>
      %cst_18 = arith.constant dense<0.000000e+00> : vector<16x128xf32>
      %21 = tpu.matmul %0, %20, %cst_18 {dimension_numbers = #tpu.dot_dimension_numbers<[1], [0], [0], [1], [0, 0, 1, 1], [], []>} : vector<16x128xbf16>, vector<128x128xbf16>, vector<16x128xf32> -> vector<16x128xf32>
      %c0_19 = arith.constant 0 : index
      %c0_20 = arith.constant 0 : index
      %22 = vector.load %arg7[%c0_19, %c0_20] : memref<1x128xf32, #tpu.memory_space<vmem>>, vector<1x128xf32>
      %23 = vector.broadcast %22 : vector<1x128xf32> to vector<16x128xf32>
      %24 = arith.addf %21, %23 : vector<16x128xf32>
      %c0_21 = arith.constant 0 : index
      %c0_22 = arith.constant 0 : index
      %25 = vector.load %arg11[%c0_21, %c0_22] : memref<16x128xf32, #tpu.memory_space<vmem>>, vector<16x128xf32>
      tpu.vector_store %arg11[%c0_21, %c0_22], %24 {strides = array<i32>} : memref<16x128xf32, #tpu.memory_space<vmem>>, vector<16x128xf32>,
    } else {
    }
    %c0_2 = arith.constant 0 : index
    %c0_3 = arith.constant 0 : index
    %4 = vector.load %arg3[%c0_2, %c0_3] : memref<128x128xbf16, #tpu.memory_space<vmem>>, vector<128x128xbf16>
    %cst = arith.constant dense<0.000000e+00> : vector<16x128xf32>
    %5 = tpu.matmul %0, %4, %cst {dimension_numbers = #tpu.dot_dimension_numbers<[1], [0], [0], [1], [0, 0, 1, 1], [], []>} : vector<16x128xbf16>, vector<128x128xbf16>, vector<16x128xf32> -> vector<16x128xf32>
    %c0_4 = arith.constant 0 : index
    %c0_5 = arith.constant 0 : index
    %6 = vector.load %arg4[%c0_4, %c0_5] : memref<1x128xf32, #tpu.memory_space<vmem>>, vector<1x128xf32>
    %7 = vector.broadcast %6 : vector<1x128xf32> to vector<16x128xf32>
    %8 = arith.addf %5, %7 : vector<16x128xf32>
    %cst_6 = arith.constant 0.000000e+00 : f32
    %9 = vector.broadcast %cst_6 : f32 to vector<16x128xf32>
    %10 = arith.maximumf %8, %9 : vector<16x128xf32>
    %11 = arith.truncf %10 : vector<16x128xf32> to vector<16x128xbf16>
    %c0_7 = arith.constant 0 : index
    %c0_8 = arith.constant 0 : index
    %12 = vector.load %arg11[%c0_7, %c0_8] : memref<16x128xf32, #tpu.memory_space<vmem>>, vector<16x128xf32>
    %c0_9 = arith.constant 0 : index
    %c0_10 = arith.constant 0 : index
    %13 = vector.load %arg5[%c0_9, %c0_10] : memref<128x128xbf16, #tpu.memory_space<vmem>>, vector<128x128xbf16>
    %cst_11 = arith.constant dense<0.000000e+00> : vector<16x128xf32>
    %14 = tpu.matmul %11, %13, %cst_11 {dimension_numbers = #tpu.dot_dimension_numbers<[1], [0], [0], [1], [0, 0, 1, 1], [], []>} : vector<16x128xbf16>, vector<128x128xbf16>, vector<16x128xf32> -> vector<16x128xf32>
    %15 = arith.addf %12, %14 : vector<16x128xf32>
    %c0_12 = arith.constant 0 : index
    %c0_13 = arith.constant 0 : index
    %16 = vector.load %arg11[%c0_12, %c0_13] : memref<16x128xf32, #tpu.memory_space<vmem>>, vector<16x128xf32>
    tpu.vector_store %arg11[%c0_12, %c0_13], %15 {strides = array<i32>} : memref<16x128xf32, #tpu.memory_space<vmem>>, vector<16x128xf32>,
    %c0_i32_14 = arith.constant 0 : i32
    %17 = arith.cmpi eq, %arg1, %c0_i32_14 : i32
    %18 = arith.extui %17 : i1 to i32
    %c0_i32_15 = arith.constant 0 : i32
    %19 = arith.cmpi ne, %18, %c0_i32_15 : i32
    scf.if %19 {
      %c0_16 = arith.constant 0 : index
      %c0_17 = arith.constant 0 : index
      %20 = vector.load %arg11[%c0_16, %c0_17] : memref<16x128xf32, #tpu.memory_space<vmem>>, vector<16x128xf32>
      %cst_18 = arith.constant dense<0.000000e+00> : vector<16xf32>
      %21 = vector.multi_reduction <add>, %20, %cst_18 [1] : vector<16x128xf32> to vector<16xf32>
      %22 = vector.shape_cast %21 : vector<16xf32> to vector<16x1xf32>
      %cst_19 = arith.constant 0.0416666679 : f32
      %23 = vector.broadcast %cst_19 : f32 to vector<16x1xf32>
      %24 = arith.mulf %22, %23 : vector<16x1xf32>
      %25 = arith.mulf %20, %20 : vector<16x128xf32>
      %cst_20 = arith.constant dense<0.000000e+00> : vector<16xf32>
      %26 = vector.multi_reduction <add>, %25, %cst_20 [1] : vector<16x128xf32> to vector<16xf32>
      %27 = vector.shape_cast %26 : vector<16xf32> to vector<16x1xf32>
      %cst_21 = arith.constant 0.0416666679 : f32
      %28 = vector.broadcast %cst_21 : f32 to vector<16x1xf32>
      %29 = arith.mulf %27, %28 : vector<16x1xf32>
      %30 = arith.mulf %24, %24 : vector<16x1xf32>
      %31 = arith.subf %29, %30 : vector<16x1xf32>
      %cst_22 = arith.constant 0.000000e+00 : f32
      %32 = vector.broadcast %cst_22 : f32 to vector<16x1xf32>
      %33 = arith.maximumf %31, %32 : vector<16x1xf32>
      %cst_23 = arith.constant 9.99999974E-6 : f32
      %34 = vector.broadcast %cst_23 : f32 to vector<16x1xf32>
      %35 = arith.addf %33, %34 : vector<16x1xf32>
      %36 = math.rsqrt %35 : vector<16x1xf32>
      %37 = vector.broadcast %24 : vector<16x1xf32> to vector<16x128xf32>
      %38 = arith.subf %20, %37 : vector<16x128xf32>
      %39 = vector.broadcast %36 : vector<16x1xf32> to vector<16x128xf32>
      %40 = arith.mulf %38, %39 : vector<16x128xf32>
      %c0_24 = arith.constant 0 : index
      %c0_25 = arith.constant 0 : index
      %41 = vector.load %arg8[%c0_24, %c0_25] : memref<1x128xf32, #tpu.memory_space<vmem>>, vector<1x128xf32>
      %42 = vector.broadcast %41 : vector<1x128xf32> to vector<16x128xf32>
      %43 = arith.mulf %40, %42 : vector<16x128xf32>
      %c0_26 = arith.constant 0 : index
      %c0_27 = arith.constant 0 : index
      %44 = vector.load %arg9[%c0_26, %c0_27] : memref<1x128xf32, #tpu.memory_space<vmem>>, vector<1x128xf32>
      %45 = vector.broadcast %44 : vector<1x128xf32> to vector<16x128xf32>
      %46 = arith.addf %43, %45 : vector<16x128xf32>
      %c0_28 = arith.constant 0 : index
      %c0_29 = arith.constant 0 : index
      %47 = vector.load %arg10[%c0_28, %c0_29] : memref<16x128xf32, #tpu.memory_space<vmem>>, vector<16x128xf32>
      tpu.vector_store %arg10[%c0_28, %c0_29], %46 {strides = array<i32>} : memref<16x128xf32, #tpu.memory_space<vmem>>, vector<16x128xf32>,
    } else {
    }
    return
  }
  func.func @transform_0(%arg0: i32, %arg1: i32) -> (i32, i32) {
    %c0_i32 = arith.constant 0 : i32
    %c0_i32_0 = arith.constant 0 : i32
    return %arg0, %c0_i32 : i32, i32
  }
  func.func @transform_1(%arg0: i32, %arg1: i32) -> (i32, i32) {
    %c0_i32 = arith.constant 0 : i32
    %c0_i32_0 = arith.constant 0 : i32
    return %c0_i32, %arg1 : i32, i32
  }
  func.func @transform_2(%arg0: i32, %arg1: i32) -> (i32, i32) {
    %c0_i32 = arith.constant 0 : i32
    %c0_i32_0 = arith.constant 0 : i32
    return %c0_i32, %arg1 : i32, i32
  }
  func.func @transform_3(%arg0: i32, %arg1: i32) -> (i32, i32) {
    %c0_i32 = arith.constant 0 : i32
    %c0_i32_0 = arith.constant 0 : i32
    return %arg1, %c0_i32 : i32, i32
  }
  func.func @transform_4(%arg0: i32, %arg1: i32) -> (i32, i32) {
    %c0_i32 = arith.constant 0 : i32
    %c0_i32_0 = arith.constant 0 : i32
    %c0_i32_1 = arith.constant 0 : i32
    return %c0_i32, %c0_i32_0 : i32, i32
  }
  func.func @transform_5(%arg0: i32, %arg1: i32) -> (i32, i32) {
    %c0_i32 = arith.constant 0 : i32
    %c0_i32_0 = arith.constant 0 : i32
    %c0_i32_1 = arith.constant 0 : i32
    return %c0_i32, %c0_i32_0 : i32, i32
  }
  func.func @transform_6(%arg0: i32, %arg1: i32) -> (i32, i32) {
    %c0_i32 = arith.constant 0 : i32
    %c0_i32_0 = arith.constant 0 : i32
    %c0_i32_1 = arith.constant 0 : i32
    return %c0_i32, %c0_i32_0 : i32, i32
  }
  func.func @transform_7(%arg0: i32, %arg1: i32) -> (i32, i32) {
    %c0_i32 = arith.constant 0 : i32
    %c0_i32_0 = arith.constant 0 : i32
    %c0_i32_1 = arith.constant 0 : i32
    return %c0_i32, %c0_i32_0 : i32, i32
  }
  func.func @transform_8(%arg0: i32, %arg1: i32) -> (i32, i32) {
    %c0_i32 = arith.constant 0 : i32
    %c0_i32_0 = arith.constant 0 : i32
    return %arg0, %c0_i32 : i32, i32
  }
}

</mosaic_0001>

<bundles_post_ra>
// kernel: tpu_custom_call.1
= control target key start
LH: loop header
LB: loop body
LE: loop exit
PB: predicated region body
PF: predicated region fallthrough
CT: control target
= control target key end

     0   :  { %13 = vsyncpa [#allocation4], 0  ;;  %s981_s0 = inlined_call_operand.hbm [shape: bf16[16,128], index: 0, kind: input, shape index: {}]   ;;  %s982_s1 = inlined_call_operand.hbm [shape: bf16[128,128], index: 1, kind: input, shape index: {}]   ;;  %s983_s2 = inlined_call_operand.vmem [shape: f32[1,128], index: 2, kind: input, shape index: {}]   ;;  %s984_s3 = inlined_call_operand.hbm [shape: bf16[128,128], index: 3, kind: input, shape index: {}]   ;;  %s985_s4 = inlined_call_operand.hbm [shape: bf16[128,128], index: 4, kind: input, shape index: {}]   ;;  %s986_s5 = inlined_call_operand.vmem [shape: f32[1,128], index: 5, kind: input, shape index: {}]   ;;  %s987_s6 = inlined_call_operand.vmem [shape: f32[1,128], index: 6, kind: input, shape index: {}]   ;;  %s988_s7 = inlined_call_operand.vmem [shape: f32[1,128], index: 7, kind: input, shape index: {}]   ;;  %s989_s8 = inlined_call_operand.hbm [shape: f32[16,128], index: 8, kind: output, shape index: {}]  }
   0x1   :  { %14 = vsyncpa [#allocation7], 0 }
   0x2   :  { %15 = vsyncpa [#allocation10], 0 }
   0x3   :  { %16 = vsyncpa [#allocation5], 0  ;;  %s797_s27 = smov [#allocation6]   ;;  %s798_s29 = smov [#allocation3]  }
   0x4   :  { %s34_s28 = sshll.u32 %s797_s27, 4  ;;  %s22_s30 = sshll.u32 %s798_s29, 4  ;;  %s35_s28 = int_to_ptr.vmem [resolvable:$true] %s34_s28  ;;  %s853_s30 = int_to_ptr.vmem [resolvable:$true] %s22_s30 }
   0x5   :  { %s679_s11 = scalar_lea.hbm %s982_s1, 1024 }
   0x6   :  { %p680_p0 = scmp.ne.s32.totalorder %s982_s1, %s679_s11  ;;  %p683_p1 = scmp.lt.u32.totalorder %s679_s11, %s982_s1 }
   0x8   :  { %p685_p2 = pnand %p683_p1, %p680_p0 }
   0xa   :  { %688 = shalt.err (!%p685_p2)
}
   0xb   :  { %s689_s16 = scalar_lea.vmem %s35_s28, 1024  ;;  %p694_p4 = scmp.lt.s32.totalorder %s35_s28, %s35_s28 }
   0xc   :  { %p690_p3 = scmp.ne.s32.totalorder %s35_s28, %s689_s16  ;;  %p695_p5 = scmp.lt.s32.totalorder %s689_s16, %s689_s16 }
   0xe   :  { %p696_p6 = por %p695_p5, %p694_p4 }
  0x10   :  { %p697_p7 = pnand %p696_p6, %p690_p3 }
  0x12   :  { %700 = shalt.err (!%p697_p7)
}
  0x13   :  { %s799_s17 = smov 64   ;;  %s800_s18 = smov 4  }
  0x14   :  { %40 = dma.hbm_to_vmem [thread:$0]  %s982_s1, 1024, %s35_s28, [#allocation7], %s799_s17, %s799_s17, %s800_s18  }
  0x15   :  { %s701_s23 = scalar_lea.hbm %s981_s0, 128 }
  0x16   :  { %p702_p8 = scmp.ne.s32.totalorder %s981_s0, %s701_s23  ;;  %p705_p9 = scmp.lt.u32.totalorder %s701_s23, %s981_s0 }
  0x18   :  { %p707_p10 = pnand %p705_p9, %p702_p8 }
  0x1a   :  { %710 = shalt.err (!%p707_p10)
}
  0x1b   :  { %s711_s29 = scalar_lea.vmem %s853_s30, 128  ;;  %p716_p12 = scmp.lt.s32.totalorder %s853_s30, %s853_s30 }
  0x1c   :  { %p712_p11 = scmp.ne.s32.totalorder %s853_s30, %s711_s29  ;;  %p717_p13 = scmp.lt.s32.totalorder %s711_s29, %s711_s29 }
  0x1e   :  { %p718_p0 = por %p717_p13, %p716_p12 }
  0x20   :  { %p719_p1 = pnand %p718_p0, %p712_p11 }
  0x22   :  { %722 = shalt.err (!%p719_p1)
}
  0x23   :  { %28 = dma.hbm_to_vmem [thread:$0]  %s981_s0, 128, %s853_s30, [#allocation4], %s799_s17, %s799_s17, %s800_s18  }
  0x24   :  { %s801_s9 = smov [#allocation8]   ;;  %s802_s11 = smov [#allocation9]  }
  0x25   :  { %s48_s10 = sshll.u32 %s801_s9, 4  ;;  %s60_s12 = sshll.u32 %s802_s11, 4  ;;  %s49_s10 = int_to_ptr.vmem [resolvable:$true] %s48_s10  ;;  %s890_s12 = int_to_ptr.vmem [resolvable:$true] %s60_s12 }
  0x26   :  { %s723_s15 = scalar_lea.hbm %s984_s3, 1024 }
  0x27   :  { %p724_p2 = scmp.ne.s32.totalorder %s984_s3, %s723_s15  ;;  %p727_p3 = scmp.lt.u32.totalorder %s723_s15, %s984_s3 }
  0x29   :  { %p729_p4 = pnand %p727_p3, %p724_p2 }
  0x2b   :  { %732 = shalt.err (!%p729_p4)
}
  0x2c   :  { %s733_s0 = scalar_lea.vmem %s49_s10, 1024  ;;  %p738_p6 = scmp.lt.s32.totalorder %s49_s10, %s49_s10 }
  0x2d   :  { %p734_p5 = scmp.ne.s32.totalorder %s49_s10, %s733_s0  ;;  %p739_p7 = scmp.lt.s32.totalorder %s733_s0, %s733_s0 }
  0x2f   :  { %p740_p8 = por %p739_p7, %p738_p6 }
  0x31   :  { %p741_p9 = pnand %p740_p8, %p734_p5 }
  0x33   :  { %744 = shalt.err (!%p741_p9)
}
  0x34   :  { %54 = dma.hbm_to_vmem [thread:$0]  %s984_s3, 1024, %s49_s10, [#allocation7], %s799_s17, %s799_s17, %s800_s18  }
  0x35   :  { %s745_s25 = scalar_lea.hbm %s985_s4, 1024 }
  0x36   :  { %p746_p10 = scmp.ne.s32.totalorder %s985_s4, %s745_s25  ;;  %p749_p11 = scmp.lt.u32.totalorder %s745_s25, %s985_s4 }
  0x38   :  { %p751_p12 = pnand %p749_p11, %p746_p10 }
  0x3a   :  { %754 = shalt.err (!%p751_p12)
}
  0x3b   :  { %s755_s28 = scalar_lea.vmem %s890_s12, 1024  ;;  %p760_p0 = scmp.lt.s32.totalorder %s890_s12, %s890_s12 }
  0x3c   :  { %p756_p13 = scmp.ne.s32.totalorder %s890_s12, %s755_s28  ;;  %p761_p1 = scmp.lt.s32.totalorder %s755_s28, %s755_s28 }
  0x3e   :  { %p762_p2 = por %p761_p1, %p760_p0 }
  0x40   :  { %p763_p3 = pnand %p762_p2, %p756_p13 }
  0x42   :  { %766 = shalt.err (!%p763_p3)
}
  0x43   :  { %66 = dma.hbm_to_vmem [thread:$0]  %s985_s4, 1024, %s890_s12, [#allocation10], %s799_s17, %s799_s17, %s800_s18  }
  0x44   :  { %789 = dma.done.wait [#allocation4], 128  }
  0x45   :  { %790 = vsyncadd [#allocation4], 4294967168 }
  0x46   :  { %791 = dma.done.wait [#allocation7], 2048  }
  0x47   :  { %792 = vsyncadd [#allocation7], 4294965248 }
  0x48   :  { %793 = dma.done.wait [#allocation10], 1024  }
  0x49   :  { %794 = vsyncadd [#allocation10], 4294966272  ;;  %v803_v0 = vmov 0.0   ;;  %vm804_vm0 = vmmov 0   ;;  %v650_v1 = vld [vmem:[#allocation6] sm:$0xff]   ;;  %v651_v2 = vld [vmem:[#allocation6 + $0x8] sm:$0xff]  }
  0x4a   :  { %593 = vmatprep.subr.bf16.mxu1 %v803_v0  ;;  %609 = vmatprep.mubr.msk.bf16.mxu1 %vm804_vm0, %v803_v0  ;;  %v652_v3 = vld [vmem:[#allocation6 + $0x10] sm:$0xff]   ;;  %v659_v4 = vld [vmem:[#allocation9] sm:$0xff]   ;;  %v653_v5 = vld [vmem:[#allocation6 + $0x18] sm:$0xff]   ;;  %s805_s13 = smov [#allocation11]  }
  0x4b   :  { %573 = vmatprep.subr.bf16.mxu0 %v803_v0  ;;  %589 = vmatprep.mubr.msk.bf16.mxu0 %vm804_vm0, %v803_v0  ;;  %v660_v6 = vld [vmem:[#allocation9 + $0x8] sm:$0xff]   ;;  %v654_v7 = vld [vmem:[#allocation6 + $0x20] sm:$0xff]   ;;  %v661_v8 = vld [vmem:[#allocation9 + $0x10] sm:$0xff]   ;;  %s502_s14 = sshll.u32 %s805_s13, 4  ;;  %s503_s14 = int_to_ptr.vmem [resolvable:$true] %s502_s14 }
  0x4c   :  { %594 = vmatpush3.bf16.msra.mxu1 %v650_v1  ;;  %574 = vmatpush3.bf16.msra.mxu0 %v659_v4  ;;  %v655_v9 = vld [vmem:[#allocation6 + $0x28] sm:$0xff]   ;;  %v662_v10 = vld [vmem:[#allocation9 + $0x18] sm:$0xff]   ;;  %v656_v11 = vld [vmem:[#allocation6 + $0x30] sm:$0xff]   ;;  %s767_s15 = scalar_lea.vmem %s503_s14, 256  ;;  %p772_p5 = scmp.lt.s32.totalorder %s503_s14, %s503_s14 }
  0x4d   :  { %595 = vmatprep.subr.bf16.mxu1 %v803_v0  ;;  %575 = vmatprep.subr.bf16.mxu0 %v803_v0  ;;  %v663_v12 = vld [vmem:[#allocation9 + $0x20] sm:$0xff]   ;;  %v657_v13 = vld [vmem:[#allocation6 + $0x38] sm:$0xff]   ;;  %v664_v14 = vld [vmem:[#allocation9 + $0x28] sm:$0xff]   ;;  %p768_p4 = scmp.ne.s32.totalorder %s503_s14, %s767_s15  ;;  %p773_p6 = scmp.lt.s32.totalorder %s767_s15, %s767_s15 }
  0x4e   :  { %v658_v15 = vld [vmem:[#allocation3] sm:$0xff]   ;;  %v665_v16 = vld [vmem:[#allocation9 + $0x30] sm:$0xff]   ;;  %v667_v18 = vld [vmem:[#allocation8] sm:$0xff]  }
  0x4f   :  { %v666_v17 = vld [vmem:[#allocation9 + $0x38] sm:$0xff]   ;;  %v668_v19 = vld [vmem:[#allocation8 + $0x8] sm:$0xff]   ;;  %v669_v20 = vld [vmem:[#allocation8 + $0x10] sm:$0xff]   ;;  %p774_p7 = por %p773_p6, %p772_p5 }
  0x50   :  { %596 = vmatpush3.bf16.msra.mxu1 %v651_v2  ;;  %576 = vmatpush3.bf16.msra.mxu0 %v660_v6  ;;  %v670_v21 = vld [vmem:[#allocation8 + $0x18] sm:$0xff]   ;;  %v671_v22 = vld [vmem:[#allocation8 + $0x20] sm:$0xff]   ;;  %v672_v23 = vld [vmem:[#allocation8 + $0x28] sm:$0xff]  }
  0x51   :  { %597 = vmatprep.subr.bf16.mxu1 %v803_v0  ;;  %577 = vmatprep.subr.bf16.mxu0 %v803_v0  ;;  %v673_v24 = vld [vmem:[#allocation8 + $0x30] sm:$0xff]   ;;  %v674_v25 = vld [vmem:[#allocation8 + $0x38] sm:$0xff]   ;;  %p775_p8 = pnand %p774_p7, %p768_p4 }
  0x52   :  { %v526_v26 = vld [vmem:[%s983_s2] ss:$0 sm:$0xff] }
  0x53   :  { %v516_v36 = vld [vmem:[%s986_s5] ss:$0 sm:$0xff] }
  0x54   :  { %598 = vmatpush3.bf16.msra.mxu1 %v652_v3  ;;  %578 = vmatpush3.bf16.msra.mxu0 %v661_v8  ;;  %v544_v63 = vld [vmem:[%s987_s6] ss:$0 sm:$0xff] }
  0x55   :  { %599 = vmatprep.subr.bf16.mxu1 %v803_v0  ;;  %579 = vmatprep.subr.bf16.mxu0 %v803_v0  ;;  %v545_v1 = vld [vmem:[%s988_s7] ss:$0 sm:$0xff] }
  0x58   :  { %600 = vmatpush3.bf16.msra.mxu1 %v653_v5  ;;  %580 = vmatpush3.bf16.msra.mxu0 %v662_v10 }
  0x59   :  { %601 = vmatprep.subr.bf16.mxu1 %v803_v0  ;;  %581 = vmatprep.subr.bf16.mxu0 %v803_v0 }
  0x5c   :  { %602 = vmatpush3.bf16.msra.mxu1 %v654_v7  ;;  %582 = vmatpush3.bf16.msra.mxu0 %v663_v12 }
  0x5d   :  { %603 = vmatprep.subr.bf16.mxu1 %v803_v0  ;;  %583 = vmatprep.subr.bf16.mxu0 %v803_v0 }
  0x60   :  { %604 = vmatpush3.bf16.msra.mxu1 %v655_v9  ;;  %584 = vmatpush3.bf16.msra.mxu0 %v664_v14 }
  0x61   :  { %605 = vmatprep.subr.bf16.mxu1 %v803_v0  ;;  %585 = vmatprep.subr.bf16.mxu0 %v803_v0 }
  0x64   :  { %606 = vmatpush3.bf16.msra.mxu1 %v656_v11  ;;  %586 = vmatpush3.bf16.msra.mxu0 %v665_v16 }
  0x65   :  { %607 = vmatprep.subr.bf16.mxu1 %v803_v0  ;;  %587 = vmatprep.subr.bf16.mxu0 %v803_v0 }
  0x68   :  { %608 = vmatpush3.bf16.msra.mxu1 %v657_v13  ;;  %588 = vmatpush3.bf16.msra.mxu0 %v666_v17 }
  0x69   :  { %613 = vmatprep.subr.bf16.mxu0 %v803_v0 }
  0x6b   :  { %610 = vmatmul.mubr.bf16.vlgmr.msra.gmra.mrb[0].mxu1 %v658_v15  ;;  %590 = vmatmul.mubr.bf16.vlgmr.msra.gmra.mrb[0].mxu0 %v658_v15 }
  0x6c   :  { %614 = vmatpush3.bf16.msra.mxu0 %v667_v18  ;;  %629 = vmatprep.mubr.msk.bf16.mxu0 %vm804_vm0, %v803_v0 }
  0x6d   :  { %615 = vmatprep.subr.bf16.mxu0 %v803_v0 }
  0x70   :  { %616 = vmatpush3.bf16.msra.mxu0 %v668_v19 }
  0x71   :  { %617 = vmatprep.subr.bf16.mxu0 %v803_v0 }
  0x74   :  { %618 = vmatpush3.bf16.msra.mxu0 %v669_v20 }
  0x75   :  { %619 = vmatprep.subr.bf16.mxu0 %v803_v0 }
  0x78   :  { %620 = vmatpush3.bf16.msra.mxu0 %v670_v21 }
  0x79   :  { %621 = vmatprep.subr.bf16.mxu0 %v803_v0 }
  0x7c   :  { %622 = vmatpush3.bf16.msra.mxu0 %v671_v22 }
  0x7d   :  { %623 = vmatprep.subr.bf16.mxu0 %v803_v0 }
  0x80   :  { %624 = vmatpush3.bf16.msra.mxu0 %v672_v23 }
  0x81   :  { %625 = vmatprep.subr.bf16.mxu0 %v803_v0 }
  0x84   :  { %626 = vmatpush3.bf16.msra.mxu0 %v673_v24 }
  0x85   :  { %627 = vmatprep.subr.bf16.mxu0 %v803_v0 }
  0x88   :  { %628 = vmatpush3.bf16.msra.mxu0 %v674_v25 }
 0x13e   :  { %v323_v27 = vpop.f32.mrb[0].mxu1 }
 0x13f   :  { %v324_v28 = vadd.f32 %v526_v26, %v323_v27  ;;  %v611_v29 = vpop.f32.mrb[1].mxu1 }
 0x140   :  { %v326_v30 = vpop.f32.mrb[2].mxu1 }
 0x141   :  { %v327_v31 = vadd.f32 %v526_v26, %v326_v30  ;;  %v612_v32 = vpop.f32.mrb[3].mxu1  ;;  %v330_v33 = vmax.f32 %v324_v28, 0.0 }
 0x143   :  { %v331_v34 = vmax.f32 %v327_v31, 0.0 }
 0x145   :  { %v332_v35 = vpack.c.bf16 %v331_v34, %v330_v33 }
 0x147   :  { %630 = vmatmul.mubr.bf16.vlgmr.msra.gmra.mrb[0].mxu0 %v332_v35 }
 0x21a   :  { %v433_v37 = vpop.f32.mrb[0].mxu0 }
 0x21b   :  { %v633_v38 = vadd.f32 %v516_v36, %v433_v37  ;;  %v631_v39 = vpop.f32.mrb[1].mxu0 }
 0x21c   :  { %v436_v40 = vpop.f32.mrb[2].mxu0 }
 0x21d   :  { %v634_v41 = vadd.f32 %v516_v36, %v436_v40  ;;  %449 = vadd.xlane.f32.xlu0 %v633_v38  ;;  %v632_v42 = vpop.f32.mrb[3].mxu0  ;;  %v455_v43 = vmul.f32 %v633_v38, %v633_v38 }
 0x21f   :  { %457 = vadd.xlane.f32.xlu1 %v455_v43  ;;  %v456_v44 = vmul.f32 %v634_v41, %v634_v41 }
 0x221   :  { %451 = vadd.xlane.f32.xlu0 %v634_v41 }
 0x223   :  { %459 = vadd.xlane.f32.xlu1 %v456_v44 }
 0x2aa   :  { %v450_v45 = vpop.xlane.xlu0 %449 }
 0x2ab   :  { %v453_v46 = vmul.f32 0.041666668, %v450_v45 }
 0x2ac   :  { %v458_v47 = vpop.xlane.xlu1 %457 }
 0x2ad   :  { %v463_v48 = vmul.f32 %v453_v46, %v453_v46  ;;  %v461_v49 = vmul.f32 0.041666668, %v458_v47  ;;  %v473_v61 = vsub.f32 %v633_v38, %v453_v46 }
 0x2ae   :  { %v452_v50 = vpop.xlane.xlu0 %451 }
 0x2af   :  { %v465_v51 = vsub.f32 %v461_v49, %v463_v48  ;;  %v454_v52 = vmul.f32 0.041666668, %v452_v50 }
 0x2b0   :  { %v460_v53 = vpop.xlane.xlu1 %459 }
 0x2b1   :  { %v467_v54 = vmax.f32 %v465_v51, 0.0  ;;  %v464_v55 = vmul.f32 %v454_v52, %v454_v52  ;;  %v462_v56 = vmul.f32 0.041666668, %v460_v53  ;;  %v474_v2 = vsub.f32 %v634_v41, %v454_v52 }
 0x2b3   :  { %v469_v57 = vadd.f32 1e-05, %v467_v54  ;;  %v466_v58 = vsub.f32 %v462_v56, %v464_v55 }
 0x2b5   :  { %675 = vrsqrt.f32 %v469_v57  ;;  %v468_v59 = vmax.f32 %v466_v58, 0.0 }
 0x2b7   :  { %v470_v60 = vadd.f32 1e-05, %v468_v59 }
 0x2b9   :  { %677 = vrsqrt.f32 %v470_v60 }
 0x2bf   :  { %v676_v62 = vpop.eup %675 }
 0x2c0   :  { %v475_v0 = vmul.f32 %v676_v62, %v473_v61 }
 0x2c2   :  { %v484_v3 = vmul.f32 %v544_v63, %v475_v0 }
 0x2c3   :  { %v678_v4 = vpop.eup %677 }
 0x2c4   :  { %v476_v5 = vmul.f32 %v678_v4, %v474_v2  ;;  %v493_v6 = vadd.f32 %v545_v1, %v484_v3 }
 0x2c6   :  { %v485_v7 = vmul.f32 %v544_v63, %v476_v5  ;;  %495 = vst [vmem:[#allocation11] sm:$0xff] %v493_v6 }
 0x2c8   :  { %v494_v8 = vadd.f32 %v545_v1, %v485_v7 }
 0x2ca   :  { %496 = vst [vmem:[#allocation11 + $0x8] sm:$0xff] %v494_v8 }
 0x2cb   :  { %778 = shalt.err (!%p775_p8)
}
 0x2cc   :  { %s779_s16 = scalar_lea.hbm %s989_s8, 256 }
 0x2cd   :  { %p780_p9 = scmp.ne.s32.totalorder %s989_s8, %s779_s16  ;;  %p783_p10 = scmp.lt.u32.totalorder %s779_s16, %s989_s8 }
 0x2cf   :  { %p785_p11 = pnand %p783_p10, %p780_p9 }
 0x2d1   :  { %788 = shalt.err (!%p785_p11)
}
 0x2d2   :  { %s806_s30 = smov 128   ;;  %s807_s22 = smov 8  }
 0x2d3   :  { %508 = dma.vmem_to_hbm [thread:$0]  %s503_s14, 256, %s989_s8, [#allocation5], %s806_s30, %s806_s30, %s807_s22  }
 0x2d4   :  { %795 = dma.done.wait [#allocation5], 256  }
 0x2d5   :  { %796 = vsyncadd [#allocation5], 4294967040 }
 0x2d6   :  { %512 = vsyncpa [#allocation4], 1 }
 0x2d7   :  { %513 = vsyncpa [#allocation7], 1 }
 0x2d8   :  { %514 = vsyncpa [#allocation10], 1 }
 0x2d9   :  { %515 = vsyncpa [#allocation5], 1 }

</bundles_post_ra>
